<compile_context>
chip_gen: v7x
topology: tpu7x:2x2x1
jax: 0.10.0
libtpu: 0.0.40
codegen_flags: <defaults>
</compile_context>

<pallas_src>
import jax
import jax.numpy as jnp
from jax.experimental import pallas as pl
from jax.experimental.pallas import tpu as pltpu

EPS = 1e-5  # PyTorch nn.LayerNorm default


def _round_up(v, m):
    return ((v + m - 1) // m) * m


def _round_down(v, m):
    return (v // m) * m


def _vmem_budget():
    """~75% of this generation's physical VMEM (v5e/v6e: 128 MiB, v7x: 64 MiB)."""
    cap = 64 * 2**20
    try:
        info = pltpu.get_tpu_info()
        cap = int(getattr(info, "vmem_capacity_bytes", cap) or cap)
    except Exception:
        pass
    return int(0.75 * cap)


def _layernorm_affine(x_ref, gamma_ref, beta_ref):
    """f32 LayerNorm + affine over the last dim (VPU/EUP work)."""
    x = x_ref[...].astype(jnp.float32)
    mean = jnp.mean(x, axis=-1, keepdims=True)
    centered = x - mean
    var = jnp.mean(centered * centered, axis=-1, keepdims=True)
    xn = centered * jax.lax.rsqrt(var + EPS)
    return xn * gamma_ref[...].astype(jnp.float32) + beta_ref[...].astype(jnp.float32)


def _ln_matmul_kernel(x_ref, gamma_ref, beta_ref, w_ref, b_ref, o_ref):
    # LayerNorm in f32, matmul in W's native dtype on the MXU (f32 accumulate).
    y = _layernorm_affine(x_ref, gamma_ref, beta_ref).astype(w_ref.dtype)
    out = jnp.dot(y, w_ref[...], preferred_element_type=jnp.float32)
    o_ref[...] = (out + b_ref[...].astype(jnp.float32)).astype(o_ref.dtype)


def _ln_reuse_matmul_kernel(x_ref, gamma_ref, beta_ref, w_ref, b_ref, o_ref, y_ref):
    # Column-tiled (cols-inner) path: LayerNorm computed once per row tile
    # (j == 0) into VMEM scratch and reused for every column block j.
    @pl.when(pl.program_id(1) == 0)
    def _():
        y_ref[...] = _layernorm_affine(x_ref, gamma_ref, beta_ref).astype(y_ref.dtype)

    out = jnp.dot(y_ref[...], w_ref[...], preferred_element_type=jnp.float32)
    o_ref[...] = (out + b_ref[...].astype(jnp.float32)).astype(o_ref.dtype)


def pre_layernorm(x, gamma, beta, w, b, *, tm=None, tn=None,
                  matmul_dtype=None, out_dtype=None, order=None):
    """out = LayerNorm(x) @ W + b (fused).

    x: (B, S, D); gamma/beta/b: (D,); w: (D, D).
    tm / tn     : row / output-column tiles (auto from VMEM budget if None).
    matmul_dtype: optional one-time wrapper cast of W (e.g. jnp.bfloat16) to hit
                  the native MXU path; LN math + accumulation stay f32.
    out_dtype   : output dtype (default x.dtype); bf16 halves writeback traffic.
    order       : None (auto) | "col_inner" | "row_inner" grid order for the
                  column-tiled path (auto minimizes HBM re-streaming).
    """
    B, S, D = x.shape
    N = B * S

    if matmul_dtype is not None and w.dtype != jnp.dtype(matmul_dtype):
        w = w.astype(matmul_dtype)          # one-time cast, outside the grid
    out_dtype = x.dtype if out_dtype is None else out_dtype

    x2 = x.reshape(N, D)
    gamma2 = gamma.reshape(1, D)
    beta2 = beta.reshape(1, D)
    b2 = b.reshape(1, D)

    s_x = jnp.dtype(x.dtype).itemsize
    s_w = jnp.dtype(w.dtype).itemsize
    s_o = jnp.dtype(out_dtype).itemsize

    budget = _vmem_budget()

    # Row alignment: 8 sublanes per vreg for 32-bit, 16 for bf16-packed tiles.
    row_align = max(32 // s_x, 32 // s_o, 8)
    max_tm = _round_up(N, row_align)
    if N >= 2 * row_align:
        # Keep >= 2 row tiles so both v7x TensorCores get work.
        max_tm = min(max_tm, _round_up(pl.cdiv(N, 2), row_align))

    def vmem_cost(tm_, tn_, with_scratch):
        c = 2 * tm_ * D * s_x            # x tile (double-buffered)
        c += 2 * tm_ * tn_ * s_o         # out tile
        c += 2 * D * tn_ * s_w           # W block (counted double-buffered)
        c += 4 * D * (s_x + s_w + 4)     # gamma / beta / bias (tiny)
        if with_scratch:
            c += tm_ * D * s_w           # LayerNorm-result scratch
        return c

    # ---- column tile ----
    if tn is not None:
        tn = D if (tn >= D or D <= 128) else max(128, _round_down(tn, 128))
    else:
        probe_tm = min(max(row_align, 256), max_tm)
        if vmem_cost(probe_tm, D, False) <= budget:
            tn = D                       # W fully resident => one HBM fetch
        else:
            tn = 128
            for cand in (4096, 2048, 1024, 512, 256, 128):
                if cand < D and vmem_cost(probe_tm, cand, True) <= budget:
                    tn = cand
                    break

    # ---- row tile: largest candidate that fits the budget & problem ----
    if tm is not None:
        tm = min(_round_up(max(tm, row_align), row_align), max_tm)
    else:
        tm = min(row_align, max_tm)
        for cand in (4096, 2048, 1024, 512, 256, 128, 64, 32, 16, 8):
            c = _round_up(cand, row_align)
            if c <= max_tm and vmem_cost(c, tn, tn < D) <= budget:
                tm = c
                break

    n_row = pl.cdiv(N, tm)
    n_col = pl.cdiv(D, tn)

    cost = pl.CostEstimate(
        flops=2 * N * D * D,
        transcendentals=N,
        bytes_accessed=N * D * s_x + D * D * s_w + N * D * s_o,
    )

    if n_col == 1:
        # Path A: W fully resident (grid-invariant block => DMA'd once).
        grid_spec = pltpu.PrefetchScalarGridSpec(
            num_scalar_prefetch=0,
            grid=(n_row,),
            in_specs=[
                pl.BlockSpec((tm, D), lambda i: (i, 0)),   # x row tile
                pl.BlockSpec((1, D), lambda i: (0, 0)),    # gamma
                pl.BlockSpec((1, D), lambda i: (0, 0)),    # beta
                pl.BlockSpec((D, D), lambda i: (0, 0)),    # W (invariant)
                pl.BlockSpec((1, D), lambda i: (0, 0)),    # bias
            ],
            out_specs=pl.BlockSpec((tm, D), lambda i: (i, 0)),
        )
        kernel = _ln_matmul_kernel
        semantics = ("parallel",)
    else:
        # Column-tiled: pick the grid order that moves fewer HBM bytes.
        w_restream = n_row * D * D * s_w     # cols-inner: W refetched per row tile
        x_restream = n_col * N * D * s_x     # rows-inner: x refetched per col block
        col_inner = (order == "col_inner") if order is not None \
            else (w_restream <= x_restream)

        if col_inner:
            # Path B: rows outer ("parallel"), cols inner ("arbitrary");
            # LN computed once per row tile into scratch, reused across j;
            # x block index is j-invariant so x is fetched once per row tile.
            grid_spec = pltpu.PrefetchScalarGridSpec(
                num_scalar_prefetch=0,
                grid=(n_row, n_col),
                in_specs=[
                    pl.BlockSpec((tm, D), lambda i, j: (i, 0)),
                    pl.BlockSpec((1, D), lambda i, j: (0, 0)),
                    pl.BlockSpec((1, D), lambda i, j: (0, 0)),
                    pl.BlockSpec((D, tn), lambda i, j: (0, j)),
                    pl.BlockSpec((1, tn), lambda i, j: (0, j)),
                ],
                out_specs=pl.BlockSpec((tm, tn), lambda i, j: (i, j)),
                scratch_shapes=[pltpu.VMEM((tm, D), w.dtype)],
            )
            kernel = _ln_reuse_matmul_kernel
            semantics = ("parallel", "arbitrary")
        else:
            # Path C: cols outer, rows inner -- each W column block is fetched
            # from HBM exactly once; x re-streamed n_col times, LN recomputed.
            grid_spec = pltpu.PrefetchScalarGridSpec(
                num_scalar_prefetch=0,
                grid=(n_col, n_row),
                in_specs=[
                    pl.BlockSpec((tm, D), lambda j, i: (i, 0)),
                    pl.BlockSpec((1, D), lambda j, i: (0, 0)),
                    pl.BlockSpec((1, D), lambda j, i: (0, 0)),
                    pl.BlockSpec((D, tn), lambda j, i: (0, j)),
                    pl.BlockSpec((1, tn), lambda j, i: (0, j)),
                ],
                out_specs=pl.BlockSpec((tm, tn), lambda j, i: (i, j)),
            )
            kernel = _ln_matmul_kernel
            semantics = ("parallel", "parallel")

    out = pl.pallas_call(
        kernel,
        out_shape=jax.ShapeDtypeStruct((N, D), out_dtype),
        grid_spec=grid_spec,
        compiler_params=pltpu.CompilerParams(
            dimension_semantics=semantics,
            vmem_limit_bytes=int(budget),
        ),
        cost_estimate=cost,
    )(x2, gamma2, beta2, w, b2)

    return out.reshape(B, S, D)


def reference(x, gamma, beta, w, b):
    xf = x.astype(jnp.float32)
    mean = jnp.mean(xf, axis=-1, keepdims=True)
    var = jnp.mean((xf - mean) ** 2, axis=-1, keepdims=True)
    y = (xf - mean) * jax.lax.rsqrt(var + EPS)
    y = y * gamma.astype(jnp.float32) + beta.astype(jnp.float32)
    return y @ w.astype(jnp.float32) + b.astype(jnp.float32)


def _rel_err(a, ref):
    a = a.astype(jnp.float32)
    ref = ref.astype(jnp.float32)
    return float(jnp.max(jnp.abs(a - ref)) / (jnp.max(jnp.abs(ref)) + 1e-6))


if __name__ == "__main__":
    key = jax.random.PRNGKey(0)

    def make(B, S, D):
        kx, kg, kb, kw, kbi = jax.random.split(jax.random.fold_in(key, D * 1000 + S), 5)
        x = jax.random.normal(kx, (B, S, D), dtype=jnp.float32)
        gamma = 1.0 + 0.1 * jax.random.normal(kg, (D,), dtype=jnp.float32)
        beta = 0.1 * jax.random.normal(kb, (D,), dtype=jnp.float32)
        w = jax.random.normal(kw, (D, D), dtype=jnp.float32) / jnp.sqrt(D)
        b = 0.01 * jax.random.normal(kbi, (D,), dtype=jnp.float32)
        return x, gamma, beta, w, b

    # 1) Small module-consistent shape (batch=2, seq=8, dim=128), f32,
    #    fused fast path (W fully resident, lane-dense output).
    x, gamma, beta, w, b = make(2, 8, 128)
    ref = reference(x, gamma, beta, w, b)
    out = jax.block_until_ready(pre_layernorm(x, gamma, beta, w, b))
    assert out.shape == x.shape
    assert jnp.allclose(out, ref.astype(out.dtype), atol=1e-3, rtol=1e-3)

    # 2) bf16 activations + bf16 weights (native MXU path): looser tolerance.
    out_bf16 = jax.block_until_ready(
        pre_layernorm(x.astype(jnp.bfloat16), gamma, beta, w.astype(jnp.bfloat16), b))
    assert _rel_err(out_bf16, ref) < 3e-2

    # 3) f32 inputs with one-time wrapper pre-cast of W to bf16.
    out_pc = jax.block_until_ready(
        pre_layernorm(x, gamma, beta, w, b, matmul_dtype=jnp.bfloat16))
    assert _rel_err(out_pc, ref) < 3e-2

    # 4) Column-tiled paths (forced tn < D), both grid orders exercised.
    x2, gamma2, beta2, w2, b2 = make(2, 64, 256)
    ref2 = reference(x2, gamma2, beta2, w2, b2)
    out_b = jax.block_until_ready(
        pre_layernorm(x2, gamma2, beta2, w2, b2, tn=128, order="col_inner"))
    assert jnp.allclose(out_b, ref2.astype(out_b.dtype), atol=1e-3, rtol=1e-3)
    out_c = jax.block_until_ready(
        pre_layernorm(x2, gamma2, beta2, w2, b2, tn=128, order="row_inner"))
    assert jnp.allclose(out_c, ref2.astype(out_c.dtype), atol=1e-3, rtol=1e-3)

    print("KERNEL_OK")
</pallas_src>

<mosaic_0001>
module attributes {stable_mosaic.version = 11 : i64} {
  func.func @_ln_matmul_kernel(%arg0: i32, %arg1: memref<8x128xf32, #tpu.memory_space<vmem>>, %arg2: memref<1x128xf32, #tpu.memory_space<vmem>>, %arg3: memref<1x128xf32, #tpu.memory_space<vmem>>, %arg4: memref<128x128xf32, #tpu.memory_space<vmem>>, %arg5: memref<1x128xf32, #tpu.memory_space<vmem>>, %arg6: memref<8x128xf32, #tpu.memory_space<vmem>>) attributes {dimension_semantics = [#tpu.dimension_semantics<parallel>], iteration_bounds = array<i64: 2>, scalar_prefetch = 0 : i64, scratch_operands = 0 : i64, tpu.core_type = #tpu.core_type<tc>, window_params = [{transform_indices = @transform_0, window_bounds = array<i64: 8, 128>}, {pipeline_mode = #tpu.pipeline_mode<synchronous>, transform_indices = @transform_1, window_bounds = array<i64: 1, 128>}, {pipeline_mode = #tpu.pipeline_mode<synchronous>, transform_indices = @transform_2, window_bounds = array<i64: 1, 128>}, {pipeline_mode = #tpu.pipeline_mode<synchronous>, transform_indices = @transform_3, window_bounds = array<i64: 128, 128>}, {pipeline_mode = #tpu.pipeline_mode<synchronous>, transform_indices = @transform_4, window_bounds = array<i64: 1, 128>}, {transform_indices = @transform_5, window_bounds = array<i64: 8, 128>}]} {
    %c0 = arith.constant 0 : index
    %c0_0 = arith.constant 0 : index
    %0 = vector.load %arg1[%c0, %c0_0] : memref<8x128xf32, #tpu.memory_space<vmem>>, vector<8x128xf32>
    %cst = arith.constant dense<0.000000e+00> : vector<8xf32>
    %1 = vector.multi_reduction <add>, %0, %cst [1] : vector<8x128xf32> to vector<8xf32>
    %2 = vector.shape_cast %1 : vector<8xf32> to vector<8x1xf32>
    %cst_1 = arith.constant 1.280000e+02 : f32
    %3 = vector.broadcast %cst_1 : f32 to vector<8x1xf32>
    %4 = arith.divf %2, %3 : vector<8x1xf32>
    %5 = vector.broadcast %4 : vector<8x1xf32> to vector<8x128xf32>
    %6 = arith.subf %0, %5 : vector<8x128xf32>
    %7 = arith.mulf %6, %6 : vector<8x128xf32>
    %cst_2 = arith.constant dense<0.000000e+00> : vector<8xf32>
    %8 = vector.multi_reduction <add>, %7, %cst_2 [1] : vector<8x128xf32> to vector<8xf32>
    %9 = vector.shape_cast %8 : vector<8xf32> to vector<8x1xf32>
    %cst_3 = arith.constant 1.280000e+02 : f32
    %10 = vector.broadcast %cst_3 : f32 to vector<8x1xf32>
    %11 = arith.divf %9, %10 : vector<8x1xf32>
    %cst_4 = arith.constant 9.99999974E-6 : f32
    %12 = vector.broadcast %cst_4 : f32 to vector<8x1xf32>
    %13 = arith.addf %11, %12 : vector<8x1xf32>
    %14 = math.rsqrt %13 : vector<8x1xf32>
    %15 = vector.broadcast %14 : vector<8x1xf32> to vector<8x128xf32>
    %16 = arith.mulf %6, %15 : vector<8x128xf32>
    %c0_5 = arith.constant 0 : index
    %c0_6 = arith.constant 0 : index
    %17 = vector.load %arg2[%c0_5, %c0_6] : memref<1x128xf32, #tpu.memory_space<vmem>>, vector<1x128xf32>
    %18 = vector.broadcast %17 : vector<1x128xf32> to vector<8x128xf32>
    %19 = arith.mulf %16, %18 : vector<8x128xf32>
    %c0_7 = arith.constant 0 : index
    %c0_8 = arith.constant 0 : index
    %20 = vector.load %arg3[%c0_7, %c0_8] : memref<1x128xf32, #tpu.memory_space<vmem>>, vector<1x128xf32>
    %21 = vector.broadcast %20 : vector<1x128xf32> to vector<8x128xf32>
    %22 = arith.addf %19, %21 : vector<8x128xf32>
    %c0_9 = arith.constant 0 : index
    %c0_10 = arith.constant 0 : index
    %23 = vector.load %arg4[%c0_9, %c0_10] : memref<128x128xf32, #tpu.memory_space<vmem>>, vector<128x128xf32>
    %cst_11 = arith.constant dense<0.000000e+00> : vector<8x128xf32>
    %24 = tpu.matmul %22, %23, %cst_11 {dimension_numbers = #tpu.dot_dimension_numbers<[1], [0], [0], [1], [0, 0, 1, 1], [], []>} : vector<8x128xf32>, vector<128x128xf32>, vector<8x128xf32> -> vector<8x128xf32>
    %c0_12 = arith.constant 0 : index
    %c0_13 = arith.constant 0 : index
    %25 = vector.load %arg5[%c0_12, %c0_13] : memref<1x128xf32, #tpu.memory_space<vmem>>, vector<1x128xf32>
    %26 = vector.broadcast %25 : vector<1x128xf32> to vector<8x128xf32>
    %27 = arith.addf %24, %26 : vector<8x128xf32>
    %c0_14 = arith.constant 0 : index
    %c0_15 = arith.constant 0 : index
    %28 = vector.load %arg6[%c0_14, %c0_15] : memref<8x128xf32, #tpu.memory_space<vmem>>, vector<8x128xf32>
    tpu.vector_store %arg6[%c0_14, %c0_15], %27 {strides = array<i32>} : memref<8x128xf32, #tpu.memory_space<vmem>>, vector<8x128xf32>,
    return
  }
  func.func @transform_0(%arg0: i32) -> (i32, i32) {
    %c0_i32 = arith.constant 0 : i32
    %c0_i32_0 = arith.constant 0 : i32
    return %arg0, %c0_i32 : i32, i32
  }
  func.func @transform_1(%arg0: i32) -> (i32, i32) {
    %c0_i32 = arith.constant 0 : i32
    %c0_i32_0 = arith.constant 0 : i32
    %c0_i32_1 = arith.constant 0 : i32
    return %c0_i32, %c0_i32_0 : i32, i32
  }
  func.func @transform_2(%arg0: i32) -> (i32, i32) {
    %c0_i32 = arith.constant 0 : i32
    %c0_i32_0 = arith.constant 0 : i32
    %c0_i32_1 = arith.constant 0 : i32
    return %c0_i32, %c0_i32_0 : i32, i32
  }
  func.func @transform_3(%arg0: i32) -> (i32, i32) {
    %c0_i32 = arith.constant 0 : i32
    %c0_i32_0 = arith.constant 0 : i32
    %c0_i32_1 = arith.constant 0 : i32
    return %c0_i32, %c0_i32_0 : i32, i32
  }
  func.func @transform_4(%arg0: i32) -> (i32, i32) {
    %c0_i32 = arith.constant 0 : i32
    %c0_i32_0 = arith.constant 0 : i32
    %c0_i32_1 = arith.constant 0 : i32
    return %c0_i32, %c0_i32_0 : i32, i32
  }
  func.func @transform_5(%arg0: i32) -> (i32, i32) {
    %c0_i32 = arith.constant 0 : i32
    %c0_i32_0 = arith.constant 0 : i32
    return %arg0, %c0_i32 : i32, i32
  }
}

</mosaic_0001>

<bundles_post_ra>
// kernel: tpu_custom_call.1
= control target key start
LH: loop header
LB: loop body
LE: loop exit
PB: predicated region body
PF: predicated region fallthrough
CT: control target
= control target key end

     0   :  { %10 = vsyncpa [#allocation3], 0  ;;  %s1006_s0 = inlined_call_operand.hbm [shape: f32[16,128], index: 0, kind: input, shape index: {}]   ;;  %s1007_s1 = inlined_call_operand.vmem [shape: f32[1,128], index: 1, kind: input, shape index: {}]   ;;  %s1008_s2 = inlined_call_operand.vmem [shape: f32[1,128], index: 2, kind: input, shape index: {}]   ;;  %s1009_s3 = inlined_call_operand.hbm [shape: f32[128,128], index: 3, kind: input, shape index: {}]   ;;  %s1010_s4 = inlined_call_operand.vmem [shape: f32[1,128], index: 4, kind: input, shape index: {}]   ;;  %s1011_s5 = inlined_call_operand.hbm [shape: f32[16,128], index: 5, kind: output, shape index: {}]  }
   0x1   :  { %12 = vsyncpa [#allocation3 + $0x1], 0 }
   0x2   :  { %13 = vsyncpa [#allocation6], 0 }
   0x3   :  { %14 = vsyncpa [#allocation4], 0 }
   0x4   :  { %16 = vsyncpa [#allocation4 + $0x1], 0  ;;  %s797_s18 = smov 0   ;;  %s799_s19 = smov 0  }
   0x5   :  { %s801_s20 = smov 0   ;;  %s803_s21 = smov 0  }
   0x6 LB: > { %s818_s22 = sadd.s32 4294967295, %s757_s21   ;;  %s472_s23 = sadd.s32 4294967294, %s757_s21   ;;  %s757_s21 = sphi %s803_s21, %s1031_s21   ;;  %s753_s20 = sphi %s801_s20, %s1030_s20   ;;  %s749_s19 = sphi %s799_s19, %s1029_s19   ;;  %s745_s18 = sphi %s797_s18, %s1028_s18  }
   0x7   : > { %p42_p0 = scmp.ne.s32.totalorder %s749_s19, %s745_s18  ;;  %p1012_p1 = scmp.eq.s32.totalorder %s818_s22, 0 }
   0x8   : > { %p156_p3 = scmp.eq.s32.totalorder %s472_s23, 1  ;;  %p473_p5 = scmp.ge.s32.totalorder %s757_s21, 1 }
   0x9   : > { %p827_p4 = por %p1012_p1, %p42_p0  ;;  %p163_p7 = scmp.lt.s32.totalorder %s757_s21, 3 }
   0xa   : > { %p832_p6 = por %p156_p3, %p42_p0  ;;  %s759_s27 = smov [#allocation5]  }
   0xb   : > { %s1015_s24 = scalar_select %p827_p4, 1, 0 }
   0xc   : > { %s1016_s25 = scalar_select %p832_p6, 1, 0 }
   0xd   : > { %p837_p8 = pnand %p473_p5, %p163_p7  ;;  %s181_s28 = sshll.u32 %s759_s27, 4  ;;  %s841_s28 = int_to_ptr.vmem [resolvable:$true] %s181_s28 }
   0xe   : > { %s853_s30 = sadd.s32 1, %s757_s21   ;;  %s29_s6 = sadd.s32 1, %s753_s20 }
   0xf   : > { %s1017_s26 = scalar_select %p837_p8, 1, 0 }
  0x10   : > { %p573_p9 = pneg %p837_p8  ;;  %s26_s7 = ssub.s32 %s757_s21, %s853_s30 }
  0x11   : > { %s629_s10 = scalar_lea.hbm %s1009_s3, 2048 }
  0x12   : > { %p848_p11 = pnand %p573_p9, %p1012_p1  ;;  %p630_p12 = scmp.ne.s32.totalorder %s1009_s3, %s629_s10 }
  0x13   : > { %p636_p5 = scmp.lt.u32.totalorder %s629_s10, %s1009_s3 }
  0x14   : > { %p631_p13 = pneg %p848_p11 }
  0x16   : > { %p632_p0 = pnand %p631_p13, %p630_p12 }
  0x18   : > { %p633_p3 = pneg %p632_p0 }
  0x1a   : > { %p638_p7 = pnand %p636_p5, %p633_p3 }
  0x1c   : > { %641 = shalt.err (!%p638_p7)
}
  0x1d   : > { %s642_s15 = scalar_lea.vmem %s841_s28, 2048  ;;  %p650_p2 = scmp.lt.s32.totalorder %s841_s28, %s841_s28 }
  0x1e   : > { %p643_p9 = scmp.ne.s32.totalorder %s841_s28, %s642_s15  ;;  %p651_p6 = scmp.lt.s32.totalorder %s642_s15, %s642_s15 }
  0x20   : > { %p645_p10 = pnand %p643_p9, %p631_p13  ;;  %p652_p4 = por %p651_p6, %p650_p2 }
  0x22   : > { %p646_p1 = pneg %p645_p10 }
  0x24   : > { %p653_p8 = pnand %p652_p4, %p646_p1 }
  0x26   : > { %656 = shalt.err (!%p653_p8)
}
  0x27   : > { %s760_s16 = smov 128   ;;  %s761_s17 = smov 8  }
  0x28   : > { %576 = dma.hbm_to_vmem [thread:$0]  (!%p848_p11), %s1009_s3, 2048, %s841_s28, [#allocation6], %s760_s16, %s760_s16, %s761_s17  }
  0x29   : > { %p27_p2 = scmp.eq.s32.totalorder %s26_s7, 0  ;;  %p36_p1 = scmp.ne.s32.totalorder %s753_s20, %s749_s19 }
  0x2a   : > { %p37_p4 = scmp.eq.s32.totalorder %s757_s21, 0  ;;  %p586_p6 = scmp.lt.s32.totalorder %s757_s21, 2 }
  0x2b   : > { %s884_s8 = scalar_select %p27_p2, %s753_s20, %s29_s6  }
  0x2c   : > { %p38_p8 = por %p37_p4, %p36_p1  ;;  %p1019_p10 = scmp.eq.s32.totalorder %s818_s22, 1 }
  0x2d   : > { %s198_s10 = sand.u32 1, %s753_s20   ;;  %s477_s11 = sshll.u32 %s757_s21, 7 }
  0x2e   : > { %p888_p12 = por %p1019_p10, %p36_p1  ;;  %s476_s12 = sshll.u32 %s198_s10, 3 }
  0x2f   : > { %s897_s14 = scalar_lea.hbm %s1006_s0, %s477_s11  ;;  %s202_s28 = scalar_lea.vmem [#allocation2], %s476_s12 }
  0x30   : > { %s209_s6 = sshll.u32 %s202_s28, 4  ;;  %p899_p11 = pnand %p586_p6, %p38_p8  ;;  %s903_s6 = int_to_ptr.vmem [resolvable:$true] %s209_s6 }
  0x31   : > { %s199_s15 = scalar_lea.sflag [#allocation3], %s198_s10  ;;  %s657_s16 = scalar_lea.hbm %s897_s14, 128 }
  0x32   : > { %p658_p13 = scmp.ne.s32.totalorder %s897_s14, %s657_s16  ;;  %p659_p0 = pneg %p899_p11 }
  0x33   : > { %s662_s27 = scalar_lea.hbm %s1006_s0, 256  ;;  %p663_p7 = scmp.lt.u32.totalorder %s897_s14, %s1006_s0 }
  0x34   : > { %p660_p3 = pnand %p659_p0, %p658_p13  ;;  %p664_p9 = scmp.lt.u32.totalorder %s662_s27, %s657_s16 }
  0x35   : > { %p666_p1 = scmp.lt.u32.totalorder %s657_s16, %s897_s14 }
  0x36   : > { %p661_p5 = pneg %p660_p3  ;;  %p665_p2 = por %p664_p9, %p663_p7 }
  0x38   : > { %p667_p4 = por %p666_p1, %p665_p2 }
  0x3a   : > { %p668_p6 = pnand %p667_p4, %p661_p5 }
  0x3c   : > { %671 = shalt.err (!%p668_p6)
}
  0x3d   : > { %s672_s10 = scalar_lea.vmem %s903_s6, 128  ;;  %s762_s29 = smov [#allocation2]  }
  0x3e   : > { %p673_p8 = scmp.ne.s32.totalorder %s903_s6, %s672_s10  ;;  %s677_s13 = sshll.u32 %s762_s29, 4  ;;  %s678_s13 = int_to_ptr.vmem [resolvable:$false] %s677_s13 }
  0x3f   : > { %s679_s28 = scalar_lea.vmem %s678_s13, 256  ;;  %p680_p3 = scmp.lt.s32.totalorder %s903_s6, %s678_s13 }
  0x40   : > { %p675_p10 = pnand %p673_p8, %p659_p0  ;;  %p681_p7 = scmp.lt.s32.totalorder %s679_s28, %s672_s10 }
  0x42   : > { %p676_p13 = pneg %p675_p10  ;;  %p682_p9 = por %p681_p7, %p680_p3 }
  0x44   : > { %p683_p2 = pnand %p682_p9, %p676_p13 }
  0x46   : > { %686 = shalt.err (!%p683_p2)
}
  0x47   : > { %580 = dma.hbm_to_vmem [thread:$0]  (!%p899_p11), %s897_s14, 128, %s903_s6, %s199_s15  }
  0x48   : > { %p1022_p5 = scmp.ne.s32.totalorder %s1017_s26, 0 }
  0x49   : > { %s933_s16 = sand.u32 (!%p1022_p5), 1, %s749_s19   ;;  %p1023_p0 = scmp.ne.s32.totalorder (!%p1022_p5), %s1015_s24, 0 }
  0x4a   : > { %218 = sbr.rel (%p1022_p5) target bundleno = 625 (0x271), region = 40  ;;  %s479_s17 = sshll.u32 (!%p1022_p5), %s933_s16, 3 }
  0x4b   : > { %s221_s23 = scalar_lea.sflag (!%p1022_p5), [#allocation3], %s933_s16  ;;  %s224_s27 = scalar_lea.vmem (!%p1022_p5), [#allocation2], %s479_s17 }
  0x51   : > { %732 = dma.done.wait (%p1023_p0), %s221_s23, 128  }
  0x52   : > { %734 = vsyncadd (%p1023_p0), %s221_s23, 4294967168  ;;  %p1024_p11 = scmp.eq.s32.totalorder %s818_s22, 0 }
  0x54   : > { %736 = dma.done.wait (%p1024_p11), [#allocation6], 2048   ;;  %p1025_p1 = pmov %p1024_p11 }
  0x55   : > { %v255_v0 = vld [vmem:[%s224_s27] sm:$0xff]  ;;  %v284_v1 = vld [vmem:[#allocation5] sm:$0xff]  ;;  %v285_v2 = vld [vmem:[#allocation5 + $0x8] sm:$0xff]  ;;  %v763_v4 = vmov 0.0|0.0   ;;  %vm764_vm0 = vmmov 0   ;;  %v765_v23 = vmov 0.0  }
  0x56   : > { %738 = vsyncadd (%p1025_p1), [#allocation6], 4294965248  ;;  %256 = vadd.xlane.f32.xlu0 %v255_v0  ;;  %v286_v3 = vld [vmem:[#allocation5 + $0x10] sm:$0xff]  ;;  %541 = vmatprep.subr.bf16.mxu0 %v763_v4  ;;  %v542_v5 = vpack.c.bf16 %v285_v2, %v284_v1  ;;  %v287_v6 = vld [vmem:[#allocation5 + $0x18] sm:$0xff]  ;;  %s486_s11 = sshll.u32 %s818_s22, 7  ;;  %s254_s12 = scalar_lea.vmem [#allocation7], %s479_s17 }
  0x57   : > { %v545_v7 = vpack.c.bf16 %v287_v6, %v286_v3  ;;  %v288_v8 = vld [vmem:[#allocation5 + $0x20] sm:$0xff]  ;;  %v289_v9 = vld [vmem:[#allocation5 + $0x28] sm:$0xff]  ;;  %v290_v15 = vld [vmem:[#allocation5 + $0x30] sm:$0xff]  ;;  %538 = vmatprep.mubr.msk.f32.mxu0 %vm764_vm0, %v765_v23  ;;  %s392_s10 = sshll.u32 %s254_s12, 4  ;;  %s962_s28 = scalar_lea.hbm %s1011_s5, %s486_s11  ;;  %s964_s10 = int_to_ptr.vmem [resolvable:$true] %s392_s10 }
  0x58   : > { %543 = vmatpush3.bf16.msra.mxu0 %v542_v5  ;;  %v548_v10 = vpack.c.bf16 %v289_v9, %v288_v8  ;;  %v291_v16 = vld [vmem:[#allocation5 + $0x38] sm:$0xff]  ;;  %v292_v18 = vld [vmem:[#allocation5 + $0x40] sm:$0xff]  ;;  %v293_v19 = vld [vmem:[#allocation5 + $0x48] sm:$0xff]  ;;  %s379_s23 = scalar_lea.sflag [#allocation4], %s933_s16  ;;  %s687_s27 = scalar_lea.vmem %s964_s10, 128 }
  0x59   : > { %544 = vmatprep.subr.bf16.mxu0 %v763_v4  ;;  %v551_v17 = vpack.c.bf16 %v291_v16, %v290_v15  ;;  %v554_v20 = vpack.c.bf16 %v293_v19, %v292_v18  ;;  %v294_v21 = vld [vmem:[#allocation5 + $0x50] sm:$0xff]  ;;  %v295_v22 = vld [vmem:[#allocation5 + $0x58] sm:$0xff]  ;;  %v296_v25 = vld [vmem:[#allocation5 + $0x60] sm:$0xff]  ;;  %p688_p4 = scmp.ne.s32.totalorder %s964_s10, %s687_s27  ;;  %s766_s22 = smov [#allocation7]  }
  0x5a   : > { %v557_v24 = vpack.c.bf16 %v295_v22, %v294_v21  ;;  %v297_v26 = vld [vmem:[#allocation5 + $0x68] sm:$0xff]  ;;  %v298_v28 = vld [vmem:[#allocation5 + $0x70] sm:$0xff]  ;;  %v299_v29 = vld [vmem:[#allocation5 + $0x78] sm:$0xff]  ;;  %s691_s17 = sshll.u32 %s766_s22, 4  ;;  %s692_s17 = int_to_ptr.vmem [resolvable:$false] %s691_s17 }
  0x5b   : > { %v560_v27 = vpack.c.bf16 %v297_v26, %v296_v25  ;;  %v563_v30 = vpack.c.bf16 %v299_v29, %v298_v28  ;;  %v482_v35 = vld [vmem:[%s1007_s1] ss:$0 sm:$0xff]  ;;  %p689_p6 = pnand %p688_p4, %p888_p12  ;;  %s693_s24 = scalar_lea.vmem %s692_s17, 256 }
  0x5c   : > { %546 = vmatpush3.bf16.msra.mxu0 %v545_v7  ;;  %v483_v37 = vld [vmem:[%s1008_s2] ss:$0 sm:$0xff]  ;;  %p694_p10 = scmp.lt.s32.totalorder %s964_s10, %s692_s17  ;;  %p695_p13 = scmp.lt.s32.totalorder %s693_s24, %s687_s27 }
  0x5d   : > { %547 = vmatprep.subr.bf16.mxu0 %v763_v4  ;;  %v484_v40 = vld [vmem:[%s1010_s4] ss:$0 sm:$0xff]  ;;  %p690_p8 = pneg %p689_p6 }
  0x5e   : > { %p696_p3 = por %p695_p13, %p694_p10 }
  0x60   : > { %549 = vmatpush3.bf16.msra.mxu0 %v548_v10  ;;  %p697_p7 = pnand %p696_p3, %p690_p8 }
  0x61   : > { %550 = vmatprep.subr.bf16.mxu0 %v763_v4 }
  0x64   : > { %552 = vmatpush3.bf16.msra.mxu0 %v551_v17 }
  0x65   : > { %553 = vmatprep.subr.bf16.mxu0 %v763_v4 }
  0x68   : > { %555 = vmatpush3.bf16.msra.mxu0 %v554_v20 }
  0x69   : > { %556 = vmatprep.subr.bf16.mxu0 %v763_v4 }
  0x6c   : > { %558 = vmatpush3.bf16.msra.mxu0 %v557_v24 }
  0x6d   : > { %559 = vmatprep.subr.bf16.mxu0 %v763_v4 }
  0x70   : > { %561 = vmatpush3.bf16.msra.mxu0 %v560_v27 }
  0x71   : > { %562 = vmatprep.subr.bf16.mxu0 %v763_v4 }
  0x74   : > { %564 = vmatpush3.bf16.msra.mxu0 %v563_v30 }
  0xe3   : > { %v257_v11 = vpop.xlane.xlu0 %256 }
  0xe4   : > { %v259_v12 = vmul.f32 0.0078125, %v257_v11 }
  0xe6   : > { %v260_v13 = vsub.f32 %v255_v0, %v259_v12 }
  0xe8   : > { %v261_v14 = vmul.f32 %v260_v13, %v260_v13 }
  0xea   : > { %262 = vadd.xlane.f32.xlu0 %v261_v14 }
 0x177   : > { %v263_v31 = vpop.xlane.xlu0 %262 }
 0x178   : > { %v264_v32 = vmul.f32 0.0078125, %v263_v31 }
 0x17a   : > { %v265_v33 = vadd.f32 1e-05, %v264_v32 }
 0x17c   : > { %627 = vrsqrt.f32 %v265_v33 }
 0x186   : > { %v628_v34 = vpop.eup %627 }
 0x187   : > { %v267_v36 = vmul.f32 %v628_v34, %v260_v13 }
 0x189   : > { %v275_v38 = vmul.f32 %v482_v35, %v267_v36 }
 0x18b   : > { %v283_v39 = vadd.f32 %v483_v37, %v275_v38 }
 0x18d   : > { %539 = vmatmul.mubr.f32.vlgmr.msra.gmra.mrb[0].mxu0 %v283_v39 }
 0x260   : > { %v373_v41 = vpop.f32.mrb[0].mxu0 }
 0x261   : > { %v374_v42 = vadd.f32 %v484_v40, %v373_v41  ;;  %v540_v43 = vpop.f32.mrb[1].mxu0 }
 0x263   : > { %377 = vst [vmem:[%s254_s12] sm:$0xff] %v374_v42 }
 0x264   : > { %700 = shalt.err (!%p697_p7)
}
 0x265   : > { %s701_s16 = scalar_lea.hbm %s962_s28, 128  ;;  %s705_s6 = scalar_lea.hbm %s1011_s5, 256 }
 0x266   : > { %p702_p9 = scmp.ne.s32.totalorder %s962_s28, %s701_s16  ;;  %p706_p0 = scmp.lt.u32.totalorder %s962_s28, %s1011_s5 }
 0x267   : > { %p707_p11 = scmp.lt.u32.totalorder %s705_s6, %s701_s16  ;;  %p709_p4 = scmp.lt.u32.totalorder %s701_s16, %s962_s28 }
 0x268   : > { %p703_p2 = pnand %p702_p9, %p888_p12 }
 0x269   : > { %p708_p1 = por %p707_p11, %p706_p0 }
 0x26a   : > { %p704_p5 = pneg %p703_p2 }
 0x26b   : > { %p710_p6 = por %p709_p4, %p708_p1 }
 0x26d   : > { %p711_p8 = pnand %p710_p6, %p704_p5 }
 0x26f   : > { %714 = shalt.err (!%p711_p8)
}
 0x270   : > { %571 = dma.vmem_to_hbm [thread:$0]  (%p888_p12), %s964_s10, 128, %s962_s28, %s379_s23  }
 0x271 PF: > { %s404_s11 = sand.u32 1, %s745_s18   ;;  %p1026_p10 = scmp.ne.s32.totalorder %s1016_s25, 0 }
 0x272   : > { %p1027_p13 = scmp.ge.s32.totalorder %s757_s21, 2  ;;  %s405_s12 = scalar_lea.sflag [#allocation4], %s404_s11 }
 0x274   : > { %p582_p3 = pnand %p1027_p13, %p1026_p10 }
 0x276   : > { %740 = dma.done.wait (!%p582_p3), %s405_s12, 128  }
 0x277   : > { %742 = vsyncadd (!%p582_p3), %s405_s12, 4294967168  ;;  %p19_p7 = scmp.ge.s32.totalorder %s853_s30, 4   ;;  %s1028_s18 = smov %s749_s19 }
 0x278   : > { %s1029_s19 = smov %s753_s20  ;;  %s1030_s20 = smov %s884_s8 }
 0x279   : > { %s1031_s21 = smov %s853_s30  ;;  %21 = sbr.rel (!%p19_p7) target bundleno = 6 (0x6), region = 89 }
 0x280   :  { %410 = vsyncpa [#allocation3], 1 }
 0x281   :  { %412 = vsyncpa [#allocation3 + $0x1], 1 }
 0x282   :  { %413 = vsyncpa [#allocation6], 1 }
 0x283   :  { %414 = vsyncpa [#allocation4], 1 }
 0x284   :  { %416 = vsyncpa [#allocation4 + $0x1], 1 }

</bundles_post_ra>
